<compile_context>
chip_gen: v6e
topology: v6e:2x2x1
jax: 0.10.0
libtpu: 0.0.40
codegen_flags: <defaults>
</compile_context>

<pallas_src>
import warnings

import jax
import jax.numpy as jnp
from jax.experimental import pallas as pl
from jax.experimental.pallas import tpu as pltpu

_LANE = 128
_SUBLANE = 8
_MIN_GRID_STEPS = 4  # keep the BlockSpec pipeline busy and feed both v7x TensorCores


def _vmem_budgets():
    """Returns (double-buffered block budget, scoped vmem limit), generation-aware."""
    cap = None
    try:
        cap = getattr(pltpu.get_tpu_info(), "vmem_capacity_bytes", None)
    except Exception:
        cap = None
    if cap is not None and cap >= 96 * 1024 * 1024:
        # v5e / v6e: 128 MiB physical VMEM -> bigger tiles, higher scoped limit.
        return 48 * 1024 * 1024, 80 * 1024 * 1024
    # v7x (64 MiB per TC) or unknown generation: stay conservative.
    return 24 * 1024 * 1024, 40 * 1024 * 1024


def _make_gray_kernel(wr, wg, wb):
    """Kernel closing over the luma weights as immediates. Block is (bn, 3, th, wt)."""

    def kernel(x_ref, o_ref):
        # Channel is a leading slab dim -> per-channel ref reads are free selects.
        r = x_ref[:, 0].astype(jnp.float32)
        g = x_ref[:, 1].astype(jnp.float32)
        b = x_ref[:, 2].astype(jnp.float32)
        y = wr * r + wg * g + wb * b                      # f32 VPU FMAs
        o_ref[...] = y[:, None].astype(o_ref.dtype)       # (bn, 1, th, wt) block

    return kernel


def _pick_blocks(n, h, w, in_itemsize, out_itemsize, budget):
    """Block sizes (bn, th, wt) for a (n, 3, h, w) array with w % 128 == 0.

    Budget counts double-buffered input (3 channels) + output (1 channel) bytes
    per spatial element, using the real itemsizes.
    """
    sub = _SUBLANE * max(1, 4 // max(1, min(in_itemsize, out_itemsize)))
    bpe = 2 * (3 * in_itemsize + out_itemsize)            # 2 buffers x (in + out)
    max_elems = max(_LANE, budget // bpe)

    th_min = min(h, sub)
    wt = w
    if th_min * wt > max_elems:                           # panoramic W: tile lanes too
        wt = max(_LANE, (max_elems // th_min) // _LANE * _LANE)
    th = h
    if th * wt > max_elems:
        th = min(h, max(th_min, (max_elems // wt) // sub * sub))
    bn = 1
    if th == h and wt == w:
        bn = min(n, max(1, max_elems // (h * w)))

    # Never collapse the whole problem into one or two grid steps: shrink bn, then
    # th, then wt until the pipeline has >= _MIN_GRID_STEPS iterations (best effort).
    def total(bn_, th_, wt_):
        return pl.cdiv(n, bn_) * pl.cdiv(h, th_) * pl.cdiv(w, wt_)

    while total(bn, th, wt) < _MIN_GRID_STEPS:
        if bn > 1:
            bn = max(1, bn // 2)
        elif th > sub:
            th = max(sub, (th // 2) // sub * sub)
        elif wt > _LANE:
            wt = max(_LANE, (wt // 2) // _LANE * _LANE)
        else:
            break
    return bn, th, wt


def _grayscale_pallas(x, weights=(0.299, 0.587, 0.114)):
    n, c, h, w = x.shape
    assert c == 3, c
    wr, wg, wb = (float(v) for v in weights)
    out_dtype = x.dtype if jnp.issubdtype(x.dtype, jnp.floating) else jnp.float32
    budget, vmem_limit = _vmem_budgets()
    kernel = _make_gray_kernel(wr, wg, wb)
    params = pltpu.CompilerParams(
        dimension_semantics=("parallel", "parallel", "parallel"),
        vmem_limit_bytes=vmem_limit,
    )

    # Normalize to a lane-dense (n, 3, hh, ww) layout with ww % 128 == 0 so the channel
    # axis stays off the last-two (sublane/lane) dims.
    if w % _LANE == 0:
        x4, hh, ww = x, h, w
        flat_len = None
    else:
        l = h * w
        lp = pl.cdiv(l, _LANE) * _LANE
        xf = x.reshape(n, 3, l)
        if lp != l:
            xf = jnp.pad(xf, ((0, 0), (0, 0), (0, lp - l)))
        hh, ww = lp // _LANE, _LANE
        x4 = xf.reshape(n, 3, hh, ww)
        flat_len = l

    bn, th, wt = _pick_blocks(
        n, hh, ww, x.dtype.itemsize, jnp.dtype(out_dtype).itemsize, budget
    )
    grid = (pl.cdiv(n, bn), pl.cdiv(hh, th), pl.cdiv(ww, wt))

    y = pl.pallas_call(
        kernel,
        out_shape=jax.ShapeDtypeStruct((n, 1, hh, ww), out_dtype),
        grid=grid,
        in_specs=[pl.BlockSpec((bn, 3, th, wt), lambda i, j, k: (i, 0, j, k))],
        out_specs=pl.BlockSpec((bn, 1, th, wt), lambda i, j, k: (i, 0, j, k)),
        compiler_params=params,
    )(x4)

    if flat_len is None:
        return y
    return y.reshape(n, 1, hh * ww)[:, :, :flat_len].reshape(n, 1, h, w)


class ToGrayscale:
    """JAX/Pallas port of contrib/colorspace.py::ToGrayscale."""

    def __init__(self):
        # Kept for API parity with the PyTorch module; the kernel bakes these in
        # as immediates instead of reading them from SMEM.
        self.weight = jnp.array([0.299, 0.587, 0.114], jnp.float32).reshape(1, 3, 1, 1)
        self._w = (0.299, 0.587, 0.114)

    def __call__(self, inputs):
        channels = inputs.shape[1]
        if channels == 3:
            return _grayscale_pallas(inputs, self._w)
        elif channels == 1:
            return inputs
        else:
            warnings.warn("Number of input channels must be either 1 or 3!")
            return inputs


if __name__ == "__main__":
    key = jax.random.PRNGKey(0)
    model = ToGrayscale()
    wvec = jnp.array([0.299, 0.587, 0.114], jnp.float32)

    # Small awkward-W image (H*W is a multiple of 128 -> re-blocked (N,3,L/128,128)).
    x = jax.random.normal(key, (2, 3, 16, 16), dtype=jnp.float32)
    out = jax.block_until_ready(model(x))
    ref = jnp.einsum("nchw,c->nhw", x, wvec)[:, None]
    assert out.shape == (2, 1, 16, 16), out.shape
    assert jnp.allclose(out, ref, atol=1e-5, rtol=1e-5), "mismatch (re-blocked path)"

    # Lane-aligned W (native 4-D path, H-tiled so the grid has >= 2 steps).
    x2 = jax.random.normal(jax.random.PRNGKey(1), (1, 3, 16, 128), dtype=jnp.float32)
    out2 = jax.block_until_ready(model(x2))
    ref2 = jnp.einsum("nchw,c->nhw", x2, wvec)[:, None]
    assert out2.shape == (1, 1, 16, 128), out2.shape
    assert jnp.allclose(out2, ref2, atol=1e-5, rtol=1e-5), "mismatch (native path)"

    # H*W not a multiple of 128 -> zero-padded flat path, sliced back.
    x3 = jax.random.normal(jax.random.PRNGKey(2), (2, 3, 5, 7), dtype=jnp.float32)
    out3 = jax.block_until_ready(model(x3))
    ref3 = jnp.einsum("nchw,c->nhw", x3, wvec)[:, None]
    assert out3.shape == (2, 1, 5, 7), out3.shape
    assert jnp.allclose(out3, ref3, atol=1e-5, rtol=1e-5), "mismatch (padded path)"

    # bf16 input (itemsize-aware tiles, f32 accumulate, bf16 output).
    x4 = jax.random.normal(jax.random.PRNGKey(3), (2, 3, 8, 128), dtype=jnp.bfloat16)
    out4 = jax.block_until_ready(model(x4))
    ref4 = jnp.einsum("nchw,c->nhw", x4.astype(jnp.float32), wvec)[:, None]
    assert out4.shape == (2, 1, 8, 128), out4.shape
    assert jnp.allclose(out4.astype(jnp.float32), ref4, atol=2e-2, rtol=2e-2), "mismatch (bf16)"

    # channels == 1 path: identity.
    x1 = jax.random.normal(key, (2, 1, 16, 16), dtype=jnp.float32)
    out1 = jax.block_until_ready(model(x1))
    assert jnp.array_equal(out1, x1)

    print("KERNEL_OK")
</pallas_src>

<mosaic_0001>
module attributes {stable_mosaic.version = 11 : i64} {
  func.func @kernel(%arg0: i32, %arg1: i32, %arg2: i32, %arg3: memref<1x3x2x128xf32, #tpu.memory_space<vmem>>, %arg4: memref<1x1x2x128xf32, #tpu.memory_space<vmem>>) attributes {dimension_semantics = [#tpu.dimension_semantics<parallel>, #tpu.dimension_semantics<parallel>, #tpu.dimension_semantics<parallel>], iteration_bounds = array<i64: 2, 1, 1>, scalar_prefetch = 0 : i64, scratch_operands = 0 : i64, tpu.core_type = #tpu.core_type<tc>, window_params = [{transform_indices = @transform_0, window_bounds = array<i64: 1, 3, 2, 128>}, {transform_indices = @transform_1, window_bounds = array<i64: 1, 1, 2, 128>}]} {
    %c0 = arith.constant 0 : index
    %c0_0 = arith.constant 0 : index
    %c0_1 = arith.constant 0 : index
    %c0_2 = arith.constant 0 : index
    %0 = vector.load %arg3[%c0, %c0_0, %c0_1, %c0_2] : memref<1x3x2x128xf32, #tpu.memory_space<vmem>>, vector<1x1x2x128xf32>
    %1 = vector.shape_cast %0 : vector<1x1x2x128xf32> to vector<1x2x128xf32>
    %c0_3 = arith.constant 0 : index
    %c1 = arith.constant 1 : index
    %c0_4 = arith.constant 0 : index
    %c0_5 = arith.constant 0 : index
    %2 = vector.load %arg3[%c0_3, %c1, %c0_4, %c0_5] : memref<1x3x2x128xf32, #tpu.memory_space<vmem>>, vector<1x1x2x128xf32>
    %3 = vector.shape_cast %2 : vector<1x1x2x128xf32> to vector<1x2x128xf32>
    %c0_6 = arith.constant 0 : index
    %c2 = arith.constant 2 : index
    %c0_7 = arith.constant 0 : index
    %c0_8 = arith.constant 0 : index
    %4 = vector.load %arg3[%c0_6, %c2, %c0_7, %c0_8] : memref<1x3x2x128xf32, #tpu.memory_space<vmem>>, vector<1x1x2x128xf32>
    %5 = vector.shape_cast %4 : vector<1x1x2x128xf32> to vector<1x2x128xf32>
    %cst = arith.constant 2.990000e-01 : f32
    %6 = vector.broadcast %cst : f32 to vector<1x2x128xf32>
    %7 = arith.mulf %6, %1 : vector<1x2x128xf32>
    %cst_9 = arith.constant 5.870000e-01 : f32
    %8 = vector.broadcast %cst_9 : f32 to vector<1x2x128xf32>
    %9 = arith.mulf %8, %3 : vector<1x2x128xf32>
    %10 = arith.addf %7, %9 : vector<1x2x128xf32>
    %cst_10 = arith.constant 1.140000e-01 : f32
    %11 = vector.broadcast %cst_10 : f32 to vector<1x2x128xf32>
    %12 = arith.mulf %11, %5 : vector<1x2x128xf32>
    %13 = arith.addf %10, %12 : vector<1x2x128xf32>
    %14 = vector.shape_cast %13 : vector<1x2x128xf32> to vector<1x1x2x128xf32>
    %c0_11 = arith.constant 0 : index
    %c0_12 = arith.constant 0 : index
    %c0_13 = arith.constant 0 : index
    %c0_14 = arith.constant 0 : index
    %15 = vector.load %arg4[%c0_11, %c0_12, %c0_13, %c0_14] : memref<1x1x2x128xf32, #tpu.memory_space<vmem>>, vector<1x1x2x128xf32>
    tpu.vector_store %arg4[%c0_11, %c0_12, %c0_13, %c0_14], %14 {strides = array<i32>} : memref<1x1x2x128xf32, #tpu.memory_space<vmem>>, vector<1x1x2x128xf32>,
    return
  }
  func.func @transform_0(%arg0: i32, %arg1: i32, %arg2: i32) -> (i32, i32, i32, i32) {
    %c0_i32 = arith.constant 0 : i32
    %c0_i32_0 = arith.constant 0 : i32
    return %arg0, %c0_i32, %arg1, %arg2 : i32, i32, i32, i32
  }
  func.func @transform_1(%arg0: i32, %arg1: i32, %arg2: i32) -> (i32, i32, i32, i32) {
    %c0_i32 = arith.constant 0 : i32
    %c0_i32_0 = arith.constant 0 : i32
    return %arg0, %c0_i32, %arg1, %arg2 : i32, i32, i32, i32
  }
}

</mosaic_0001>

<bundles_post_ra>
// kernel: tpu_custom_call.1
= control target key start
LH: loop header
LB: loop body
LE: loop exit
PB: predicated region body
PF: predicated region fallthrough
CT: control target
= control target key end

     0   :  { %6 = vsyncpa [#allocation3], 0  ;;  %s614_s0 = inlined_call_operand.hbm [shape: f32[2,3,2,128], index: 0, kind: input, shape index: {}]   ;;  %s615_s1 = inlined_call_operand.hbm [shape: f32[2,1,2,128], index: 1, kind: output, shape index: {}]  }
   0x1   :  { %8 = vsyncpa [#allocation3 + $0x1], 0 }
   0x2   :  { %9 = vsyncpa [#allocation4], 0 }
   0x3   :  { %11 = vsyncpa [#allocation4 + $0x1], 0  ;;  %s481_s6 = smov 0   ;;  %s483_s7 = smov 0  }
   0x4   :  { %s485_s8 = smov 0   ;;  %s487_s9 = smov 0  }
   0x5   :  { %s489_s10 = smov 0   ;;  %s491_s11 = smov 0  }
   0x6 LB: > { %s277_s12 = sadd.s32 4294967295, %s465_s11   ;;  %s278_s13 = sadd.s32 4294967294, %s465_s11   ;;  %s465_s11 = sphi %s491_s11, %s17_s11   ;;  %s461_s10 = sphi %s489_s10, %s626_s10   ;;  %s457_s9 = sphi %s487_s9, %s625_s9   ;;  %s453_s8 = sphi %s485_s8, %s624_s8   ;;  %s449_s7 = sphi %s483_s7, %s623_s7   ;;  %s445_s6 = sphi %s481_s6, %s622_s6  }
   0x7   : > { %s36_s14 = sadd.s32 1, %s461_s10  ;;  %s47_s15 = sadd.s32 1, %s453_s8 }
   0x8   : > { %p38_p0 = scmp.ge.s32.totalorder %s36_s14, 2  ;;  %p54_p1 = scmp.ne.s32.totalorder %s453_s8, %s449_s7 }
   0x9   : > { %p55_p2 = scmp.eq.s32.totalorder %s465_s11, 0  ;;  %p60_p3 = scmp.ne.s32.totalorder %s449_s7, %s445_s6 }
   0xa   : > { %s628_s14 = smov (%p38_p0, %s36_s14), 0  ;;  %p61_p5 = scmp.eq.s32.totalorder %s277_s12, 0 }
   0xb   : > { %p522_p4 = por %p55_p2, %p54_p1  ;;  %s40_s17 = ssub.s32 %s461_s10, %s628_s14 }
   0xc   : > { %p88_p6 = scmp.eq.s32.totalorder %s277_s12, 1  ;;  %p45_p7 = scmp.eq.s32.totalorder %s40_s17, 0 }
   0xd   : > { %p528_p8 = por %p61_p5, %p60_p3  ;;  %p94_p10 = scmp.eq.s32.totalorder %s278_s13, 1 }
   0xe   : > { %p532_p9 = por %p88_p6, %p54_p1  ;;  %p305_p13 = scmp.lt.s32.totalorder %s465_s11, 2 }
   0xf   : > { %s537_s20 = scalar_select %p45_p7, %s453_s8, %s47_s15  }
  0x10   : > { %p539_p11 = por %p94_p10, %p60_p3  ;;  %s114_s22 = sand.u32 1, %s453_s8  }
  0x11   : > { %s290_s23 = smul.u32 6, %s114_s22  ;;  %p549_p0 = pnand %p305_p13, %p522_p4 }
  0x12   : > { %s291_s24 = smul.u32 96, %s461_s10  ;;  %p282_p1 = scmp.ge.s32.totalorder %s465_s11, 1 }
  0x13   : > { %s118_s29 = scalar_lea.vmem [#allocation2], %s290_s23  ;;  %s115_s2 = scalar_lea.sflag [#allocation3], %s114_s22 }
  0x14   : > { %s126_s28 = scalar_lea.hbm %s614_s0, %s291_s24  ;;  %s127_s30 = sshll.u32 %s118_s29, 4  ;;  %s128_s30 = int_to_ptr.vmem [resolvable:$true] %s127_s30 }
  0x15   : > { %p359_p2 = pneg %p549_p0  ;;  %s370_s3 = scalar_lea.vmem %s128_s30, 96 }
  0x16   : > { %p371_p3 = scmp.ne.s32.totalorder %s128_s30, %s370_s3  ;;  %s467_s4 = smov [#allocation2]  }
  0x17   : > { %s375_s5 = sshll.u32 %s467_s4, 4  ;;  %s376_s5 = int_to_ptr.vmem [resolvable:$false] %s375_s5 }
  0x18   : > { %p373_p5 = pnand %p371_p3, %p359_p2  ;;  %s377_s12 = scalar_lea.vmem %s376_s5, 192 }
  0x19   : > { %p378_p4 = scmp.lt.s32.totalorder %s128_s30, %s376_s5  ;;  %p379_p7 = scmp.lt.s32.totalorder %s377_s12, %s370_s3 }
  0x1a   : > { %p374_p6 = pneg %p373_p5 }
  0x1b   : > { %p380_p10 = por %p379_p7, %p378_p4 }
  0x1d   : > { %p381_p13 = pnand %p380_p10, %p374_p6 }
  0x1f   : > { %384 = shalt.err (!%p381_p13)
}
  0x20   : > { %s468_s13 = smov 32   ;;  %s469_s15 = smov 2  }
  0x21   : > { %300 = dma.hbm_to_vmem [thread:$0]  (!%p549_p0), %s126_s28, 96, %s128_s30, %s115_s2, %s468_s13, %s468_s13, %s469_s15  }
  0x22   : > { %p135_p12 = scmp.lt.s32.totalorder %s465_s11, 3 }
  0x24   : > { %p136_p2 = pnand %p282_p1, %p135_p12 }
  0x25   : > { %s565_s16 = sand.u32 (!%p136_p2), 1, %s449_s7  }
  0x26   : > { %139 = sbr.rel (%p136_p2) target bundleno = 70 (0x46), region = 24  ;;  %s142_s22 = scalar_lea.sflag (!%p136_p2), [#allocation3], %s565_s16 }
  0x27   : > { %s292_s17 = smul.u32 (!%p136_p2), 6, %s565_s16 }
  0x29   : > { %s145_s23 = scalar_lea.vmem (!%p136_p2), [#allocation2], %s292_s17 }
  0x2b   : > { %436 = dma.done.wait (%p528_p8), %s142_s22, 96  }
  0x2c   : > { %438 = vsyncadd (%p528_p8), %s142_s22, 4294967200  ;;  %s283_s24 = sshll.u32 %s565_s16, 1  ;;  %v164_v0 = vld [vmem:[%s145_s23] sm:$0x3]  ;;  %v284_v1 = vld [vmem:[%s145_s23 + $0x2] sm:$0x3] }
  0x2d   : > { %v285_v2 = vld [vmem:[%s145_s23 + $0x4] sm:$0x3]  ;;  %v169_v3 = vmul.f32 0.299, %v164_v0  ;;  %v170_v4 = vmul.f32 0.587, %v284_v1 }
  0x2e   : > { %v172_v5 = vmul.f32 0.114, %v285_v2  ;;  %s163_s25 = scalar_lea.vmem [#allocation5], %s283_s24  ;;  %s287_s27 = sshll.u32 %s457_s9, 5 }
  0x2f   : > { %s191_s26 = sshll.u32 %s163_s25, 4  ;;  %v171_v6 = vadd.f32 %v170_v4, %v169_v3  ;;  %s189_s29 = scalar_lea.hbm %s615_s1, %s287_s27  ;;  %s192_s26 = int_to_ptr.vmem [resolvable:$true] %s191_s26 }
  0x30   : > { %s176_s30 = scalar_lea.sflag [#allocation4], %s565_s16  ;;  %s385_s2 = scalar_lea.vmem %s192_s26, 32 }
  0x31   : > { %v173_v7 = vadd.f32 %v172_v5, %v171_v6  ;;  %p386_p8 = scmp.ne.s32.totalorder %s192_s26, %s385_s2  ;;  %s470_s3 = smov [#allocation5]  }
  0x32   : > { %s389_s4 = sshll.u32 %s470_s3, 4  ;;  %s390_s4 = int_to_ptr.vmem [resolvable:$false] %s389_s4 }
  0x33   : > { %174 = vst [vmem:[%s163_s25] sm:$0x3] %v173_v7  ;;  %p387_p12 = pnand %p386_p8, %p532_p9  ;;  %s391_s5 = scalar_lea.vmem %s390_s4, 64 }
  0x34   : > { %p392_p1 = scmp.lt.s32.totalorder %s192_s26, %s390_s4  ;;  %p393_p3 = scmp.lt.s32.totalorder %s391_s5, %s385_s2 }
  0x35   : > { %p388_p0 = pneg %p387_p12 }
  0x36   : > { %p394_p5 = por %p393_p3, %p392_p1 }
  0x38   : > { %p395_p6 = pnand %p394_p5, %p388_p0 }
  0x3a   : > { %398 = shalt.err (!%p395_p6)
}
  0x3b   : > { %s399_s9 = scalar_lea.hbm %s189_s29, 32  ;;  %s403_s15 = scalar_lea.hbm %s615_s1, 64 }
  0x3c   : > { %p400_p4 = scmp.ne.s32.totalorder %s189_s29, %s399_s9  ;;  %p404_p13 = scmp.lt.s32.totalorder %s189_s29, %s615_s1 }
  0x3d   : > { %p405_p2 = scmp.lt.s32.totalorder %s403_s15, %s399_s9 }
  0x3e   : > { %p401_p7 = pnand %p400_p4, %p532_p9 }
  0x3f   : > { %p406_p8 = por %p405_p2, %p404_p13 }
  0x40   : > { %p402_p10 = pneg %p401_p7 }
  0x42   : > { %p407_p12 = pnand %p406_p8, %p402_p10 }
  0x44   : > { %410 = shalt.err (!%p407_p12)
}
  0x45   : > { %295 = dma.vmem_to_hbm [thread:$0]  (%p532_p9), %s192_s26, 32, %s189_s29, %s176_s30  }
  0x46 PF: > { %s203_s22 = sand.u32 1, %s445_s6   ;;  %p621_p0 = scmp.ge.s32.totalorder %s465_s11, 2 }
  0x47   : > { %s204_s23 = scalar_lea.sflag [#allocation4], %s203_s22 }
  0x48   : > { %p302_p1 = pnand %p621_p0, %p539_p11 }
  0x4a   : > { %p303_p3 = pneg %p302_p1 }
  0x4c   : > { %440 = dma.done.wait (%p303_p3), %s204_s23, 32  }
  0x4d   : > { %442 = vsyncadd (%p303_p3), %s204_s23, 4294967264  ;;  %s17_s11 = sadd.s32 1, %s465_s11   ;;  %s622_s6 = smov %s449_s7 }
  0x4e   : > { %p14_p5 = scmp.ge.s32.totalorder %s17_s11, 4   ;;  %s623_s7 = smov %s453_s8 }
  0x4f   : > { %s624_s8 = smov %s537_s20  ;;  %s625_s9 = smov %s461_s10 }
  0x50   : > { %s626_s10 = smov %s628_s14  ;;  %16 = sbr.rel (!%p14_p5) target bundleno = 6 (0x6), region = 71 }
  0x55   :  { %209 = vsyncpa [#allocation3], 1 }
  0x56   :  { %211 = vsyncpa [#allocation3 + $0x1], 1 }
  0x57   :  { %212 = vsyncpa [#allocation4], 1 }
  0x58   :  { %214 = vsyncpa [#allocation4 + $0x1], 1 }

</bundles_post_ra>
